<compile_context>
chip_gen: v5e
topology: v5e:2x2
jax: 0.10.0
libtpu: 0.0.40
codegen_flags: <defaults>
</compile_context>

<pallas_src>
import functools

import jax
import jax.numpy as jnp
from jax.experimental import pallas as pl
from jax.experimental.pallas import tpu as pltpu


# ----------------------------- Pallas kernel -------------------------------
def enhanced_mlp_kernel(x_ref, m1_ref, m2_ref, out_ref, *, inv_seq_len):
    # x_ref block: (L+1, TN)   -- row L is an all-ones bias row
    # m1_ref     : (d_model*P + 1, L+1)  fused (center+conv+conv+linear1 | b1)
    # m2_ref     : (pred_len, d_model*P + 1)  (linear2 | b2)
    x = x_ref[...]                                              # (L+1, TN)

    # seq_mean per column; the appended ones-row contributes exactly 1.0.
    col_sum = jnp.sum(x.astype(jnp.float32), axis=0, keepdims=True)
    seq_mean = (col_sum - 1.0) * inv_seq_len                    # (1, TN)

    # First fused matmul: centering + both residual convs + Linear1 + b1.
    h = jnp.dot(m1_ref[...], x, preferred_element_type=jnp.float32)
    h = jnp.maximum(h, 0.0).astype(m2_ref.dtype)                # ReLU (bias row stays 1)

    # Second matmul: Linear2 + b2 (via the carried ones row of h).
    y = jnp.dot(m2_ref[...], h, preferred_element_type=jnp.float32)

    out_ref[...] = y + seq_mean                                 # add seq_mean back


# ------------------------------ glue / wrapper ------------------------------
def _banded_conv_matrix(w, seq_len, pad):
    """C[i, t] = w[i - t + pad] (zero outside band).  x_row @ C == conv1d(x)."""
    k = w.shape[0]
    i = jnp.arange(seq_len)[:, None]
    t = jnp.arange(seq_len)[None, :]
    j = i - t + pad
    valid = (j >= 0) & (j < k)
    return jnp.where(valid, w[jnp.clip(j, 0, k - 1)], 0.0).astype(jnp.float32)


def _round_up(n, m):
    return -(-n // m) * m


@functools.partial(jax.jit,
                   static_argnames=("period_len", "pred_len", "d_model",
                                    "compute_dtype", "lane_tile"))
def enhanced_model_forward(x, w_conv1, w_conv2, W1, b1, W2, b2, *,
                           period_len, pred_len, d_model,
                           compute_dtype=jnp.bfloat16, lane_tile=128):
    B, L, C = x.shape
    P = period_len
    DP = d_model * P
    DP1, L1 = DP + 1, L + 1
    f32 = jnp.float32
    hp = jax.lax.Precision.HIGHEST

    # ---- fold the entire linear prefix into one matrix (f32, wrapper side) --
    pad1, pad2 = P // 2, P // 8
    C1T = _banded_conv_matrix(w_conv1, L, pad1).T               # (L, L)
    C2T = _banded_conv_matrix(w_conv2, L, pad2).T               # (L, L)
    eyeL = jnp.eye(L, dtype=f32)
    center = eyeL - jnp.full((L, L), 1.0 / L, f32)              # mean removal
    prefix = jnp.dot(jnp.dot(eyeL + C2T, eyeL + C1T, precision=hp),
                     center, precision=hp)                      # (L, L)

    eyeP = jnp.eye(P, dtype=f32)
    T1T = jnp.kron(W1.astype(f32), eyeP)                        # (DP, L)
    T2T = jnp.kron(W2.astype(f32), eyeP)                        # (pred_len, DP)
    b1e = jnp.kron(b1.astype(f32), jnp.ones((P,), f32))         # (DP,)
    b2e = jnp.kron(b2.astype(f32), jnp.ones((P,), f32))         # (pred_len,)

    M1 = jnp.dot(T1T, prefix, precision=hp)                     # (DP, L)

    # Bias folding: ones-row on the activations, extra column/row on weights.
    M1_aug = (jnp.zeros((DP1, L1), f32)
              .at[:DP, :L].set(M1)
              .at[:DP, L].set(b1e)
              .at[DP, L].set(1.0))                              # (DP+1, L+1)
    M2_aug = jnp.concatenate([T2T, b2e[:, None]], axis=1)       # (pred_len, DP+1)
    M1c = M1_aug.astype(compute_dtype)
    M2c = M2_aug.astype(compute_dtype)

    # ---- lane-dense activation packing: (B, L, C) -> (L+1, Npad) ------------
    N = B * C
    Npad = _round_up(max(N, lane_tile), lane_tile)
    xt = jnp.transpose(x, (1, 0, 2)).reshape(L, N)              # column n = b*C + c
    x_packed = (jnp.zeros((L1, Npad), f32)
                .at[:L, :N].set(xt)
                .at[L, :].set(1.0)).astype(compute_dtype)       # ones bias row

    # ---- VMEM budget + cost estimate ----------------------------------------
    isz = jnp.dtype(compute_dtype).itemsize

    def padded_bytes(r, c, item):                               # (8,128)-tile padded
        sub = 8 * (4 // item)
        return _round_up(r, sub) * _round_up(c, 128) * item

    weight_vmem = padded_bytes(DP1, L1, isz) + padded_bytes(pred_len, DP1, isz)
    act_vmem = 2 * (padded_bytes(L1, lane_tile, isz)            # x, double-buffered
                    + padded_bytes(pred_len, lane_tile, 4))     # out, double-buffered
    vmem_limit = int(min(max(2 * (weight_vmem + act_vmem) + (4 << 20),
                             16 << 20), 96 << 20))

    cost = pl.CostEstimate(
        flops=2 * Npad * (DP1 * L1 + pred_len * DP1),
        transcendentals=0,
        bytes_accessed=(x_packed.size * isz + M1c.size * isz + M2c.size * isz
                        + pred_len * Npad * 4))

    n_tiles = Npad // lane_tile
    grid_spec = pltpu.PrefetchScalarGridSpec(
        num_scalar_prefetch=0,
        grid=(n_tiles,),
        in_specs=[
            pl.BlockSpec((L1, lane_tile), lambda n: (0, n)),            # x tile
            pl.BlockSpec((DP1, L1), lambda n: (0, 0),
                         pipeline_mode=pl.Buffered(1)),                 # fused W1
            pl.BlockSpec((pred_len, DP1), lambda n: (0, 0),
                         pipeline_mode=pl.Buffered(1)),                 # fused W2
        ],
        out_specs=pl.BlockSpec((pred_len, lane_tile), lambda n: (0, n)),
    )

    out = pl.pallas_call(
        functools.partial(enhanced_mlp_kernel, inv_seq_len=1.0 / L),
        out_shape=jax.ShapeDtypeStruct((pred_len, Npad), jnp.float32),
        grid_spec=grid_spec,
        compiler_params=pltpu.CompilerParams(
            dimension_semantics=("parallel",),
            vmem_limit_bytes=vmem_limit),
        cost_estimate=cost,
    )(x_packed, M1c, M2c)

    # ---- unpack lanes back to (B, pred_len, C) -------------------------------
    y = out[:, :N].reshape(pred_len, B, C).transpose(1, 0, 2)
    return y


# --------------------------- pure-JAX reference ----------------------------
def reference_forward(x, w_conv1, w_conv2, W1, b1, W2, b2,
                      *, period_len, seg_num_x, seg_num_y):
    B, L, C = x.shape
    P = period_len
    pred_len = seg_num_y * P
    pad1, pad2 = P // 2, P // 8

    mean = jnp.mean(x, axis=1, keepdims=True)                # (B,1,C)
    xc = jnp.transpose(x - mean, (0, 2, 1)).reshape(-1, L)   # (B*C, L)

    def conv1d(z, w, pad):
        k = w.shape[0]
        zp = jnp.pad(z, ((0, 0), (pad, pad)))
        return sum(w[j] * zp[:, j:j + L] for j in range(k))

    z1 = conv1d(xc, w_conv1, pad1) + xc
    z2 = conv1d(z1, w_conv2, pad2) + z1
    m = z2.reshape(-1, seg_num_x, P).transpose(0, 2, 1)      # (B*C, P, sx)
    h = jax.nn.relu(m @ W1.T + b1)
    y = h @ W2.T + b2                                        # (B*C, P, sy)
    y = y.transpose(0, 2, 1).reshape(B, C, pred_len)
    return y.transpose(0, 2, 1) + mean                       # (B, pred_len, C)


# ---------------------------------- main ------------------------------------
if __name__ == "__main__":
    # Small config consistent with the module.
    seq_len, pred_len, enc_in, period_len, d_model = 32, 16, 4, 8, 32
    seg_num_x = seq_len // period_len      # 4
    seg_num_y = pred_len // period_len     # 2
    k1 = 1 + 2 * (period_len // 2)         # 9
    k2 = 1 + 2 * (period_len // 8)         # 3
    B = 2

    key = jax.random.PRNGKey(0)
    kx, k_c1, k_c2, k_w1, k_b1, k_w2, k_b2 = jax.random.split(key, 7)

    x = jax.random.normal(kx, (B, seq_len, enc_in), jnp.float32)
    w_conv1 = jax.random.normal(k_c1, (k1,), jnp.float32) / jnp.sqrt(k1)
    w_conv2 = jax.random.normal(k_c2, (k2,), jnp.float32) / jnp.sqrt(k2)
    W1 = jax.random.normal(k_w1, (d_model, seg_num_x), jnp.float32) / jnp.sqrt(seg_num_x)
    b1 = jax.random.normal(k_b1, (d_model,), jnp.float32) * 0.02
    W2 = jax.random.normal(k_w2, (seg_num_y, d_model), jnp.float32) / jnp.sqrt(d_model)
    b2 = jax.random.normal(k_b2, (seg_num_y,), jnp.float32) * 0.02

    y_ref = reference_forward(
        x, w_conv1, w_conv2, W1, b1, W2, b2,
        period_len=period_len, seg_num_x=seg_num_x, seg_num_y=seg_num_y)

    # f32-operand path: tight correctness check against the PyTorch-semantics ref.
    y32 = enhanced_model_forward(
        x, w_conv1, w_conv2, W1, b1, W2, b2,
        period_len=period_len, pred_len=pred_len, d_model=d_model,
        compute_dtype=jnp.float32)
    y32 = jax.block_until_ready(y32)
    assert y32.shape == (B, pred_len, enc_in), y32.shape
    assert jnp.allclose(y32, y_ref, atol=1e-4, rtol=1e-4), \
        float(jnp.max(jnp.abs(y32 - y_ref)))

    # bf16-operand / f32-accumulate fast path (production): looser tolerance.
    ybf = enhanced_model_forward(
        x, w_conv1, w_conv2, W1, b1, W2, b2,
        period_len=period_len, pred_len=pred_len, d_model=d_model,
        compute_dtype=jnp.bfloat16)
    ybf = jax.block_until_ready(ybf)
    assert ybf.shape == (B, pred_len, enc_in), ybf.shape
    assert jnp.allclose(ybf, y_ref, atol=5e-2, rtol=5e-2), \
        float(jnp.max(jnp.abs(ybf - y_ref)))

    print("KERNEL_OK")
</pallas_src>

<mosaic_0001>
module attributes {stable_mosaic.version = 11 : i64} {
  func.func @enhanced_mlp_kernel(%arg0: i32, %arg1: memref<33x128xf32, #tpu.memory_space<vmem>>, %arg2: memref<257x33xf32, #tpu.memory_space<vmem>>, %arg3: memref<16x257xf32, #tpu.memory_space<vmem>>, %arg4: memref<16x128xf32, #tpu.memory_space<vmem>>) attributes {dimension_semantics = [#tpu.dimension_semantics<parallel>], iteration_bounds = array<i64: 1>, scalar_prefetch = 0 : i64, scratch_operands = 0 : i64, tpu.core_type = #tpu.core_type<tc>, window_params = [{transform_indices = @transform_0, window_bounds = array<i64: 33, 128>}, {pipeline_mode = #tpu.pipeline_mode<synchronous>, transform_indices = @transform_1, window_bounds = array<i64: 257, 33>}, {pipeline_mode = #tpu.pipeline_mode<synchronous>, transform_indices = @transform_2, window_bounds = array<i64: 16, 257>}, {transform_indices = @transform_3, window_bounds = array<i64: 16, 128>}]} {
    %c0 = arith.constant 0 : index
    %c0_0 = arith.constant 0 : index
    %0 = vector.load %arg1[%c0, %c0_0] : memref<33x128xf32, #tpu.memory_space<vmem>>, vector<33x128xf32>
    %cst = arith.constant dense<0.000000e+00> : vector<128xf32>
    %1 = vector.multi_reduction <add>, %0, %cst [0] : vector<33x128xf32> to vector<128xf32>
    %2 = vector.shape_cast %1 : vector<128xf32> to vector<1x128xf32>
    %cst_1 = arith.constant 1.000000e+00 : f32
    %3 = vector.broadcast %cst_1 : f32 to vector<1x128xf32>
    %4 = arith.subf %2, %3 : vector<1x128xf32>
    %cst_2 = arith.constant 3.125000e-02 : f32
    %5 = vector.broadcast %cst_2 : f32 to vector<1x128xf32>
    %6 = arith.mulf %4, %5 : vector<1x128xf32>
    %c0_3 = arith.constant 0 : index
    %c0_4 = arith.constant 0 : index
    %7 = vector.load %arg2[%c0_3, %c0_4] : memref<257x33xf32, #tpu.memory_space<vmem>>, vector<257x33xf32>
    %cst_5 = arith.constant dense<0.000000e+00> : vector<257x128xf32>
    %8 = tpu.matmul %7, %0, %cst_5 {dimension_numbers = #tpu.dot_dimension_numbers<[1], [0], [0], [1], [0, 0, 1, 1], [], []>} : vector<257x33xf32>, vector<33x128xf32>, vector<257x128xf32> -> vector<257x128xf32>
    %cst_6 = arith.constant 0.000000e+00 : f32
    %9 = vector.broadcast %cst_6 : f32 to vector<257x128xf32>
    %10 = arith.maximumf %8, %9 : vector<257x128xf32>
    %c0_7 = arith.constant 0 : index
    %c0_8 = arith.constant 0 : index
    %11 = vector.load %arg3[%c0_7, %c0_8] : memref<16x257xf32, #tpu.memory_space<vmem>>, vector<16x257xf32>
    %cst_9 = arith.constant dense<0.000000e+00> : vector<16x128xf32>
    %12 = tpu.matmul %11, %10, %cst_9 {dimension_numbers = #tpu.dot_dimension_numbers<[1], [0], [0], [1], [0, 0, 1, 1], [], []>} : vector<16x257xf32>, vector<257x128xf32>, vector<16x128xf32> -> vector<16x128xf32>
    %13 = vector.broadcast %6 : vector<1x128xf32> to vector<16x128xf32>
    %14 = arith.addf %12, %13 : vector<16x128xf32>
    %c0_10 = arith.constant 0 : index
    %c0_11 = arith.constant 0 : index
    %15 = vector.load %arg4[%c0_10, %c0_11] : memref<16x128xf32, #tpu.memory_space<vmem>>, vector<16x128xf32>
    tpu.vector_store %arg4[%c0_10, %c0_11], %14 {strides = array<i32>} : memref<16x128xf32, #tpu.memory_space<vmem>>, vector<16x128xf32>,
    return
  }
  func.func @transform_0(%arg0: i32) -> (i32, i32) {
    %c0_i32 = arith.constant 0 : i32
    %c0_i32_0 = arith.constant 0 : i32
    return %c0_i32, %arg0 : i32, i32
  }
  func.func @transform_1(%arg0: i32) -> (i32, i32) {
    %c0_i32 = arith.constant 0 : i32
    %c0_i32_0 = arith.constant 0 : i32
    %c0_i32_1 = arith.constant 0 : i32
    return %c0_i32, %c0_i32_0 : i32, i32
  }
  func.func @transform_2(%arg0: i32) -> (i32, i32) {
    %c0_i32 = arith.constant 0 : i32
    %c0_i32_0 = arith.constant 0 : i32
    %c0_i32_1 = arith.constant 0 : i32
    return %c0_i32, %c0_i32_0 : i32, i32
  }
  func.func @transform_3(%arg0: i32) -> (i32, i32) {
    %c0_i32 = arith.constant 0 : i32
    %c0_i32_0 = arith.constant 0 : i32
    return %c0_i32, %arg0 : i32, i32
  }
}

</mosaic_0001>

<bundles_post_ra>
// kernel: enhanced_model_forward.1
= control target key start
LH: loop header
LB: loop body
LE: loop exit
PB: predicated region body
PF: predicated region fallthrough
CT: control target
= control target key end

     0   :  { %vm22_vm0 = vcmask 1040384   ;;  %vm66_vm1 = vcmask 269312   ;;  %vm324_vm2 = vcmask 7168   ;;  %s713_s0 = inlined_call_operand.vmem [shape: f32[33,128], index: 0, kind: input, shape index: {}]   ;;  %s714_s1 = inlined_call_operand.vmem [shape: f32[257,33], index: 1, kind: input, shape index: {}]   ;;  %s715_s2 = inlined_call_operand.vmem [shape: f32[16,257], index: 2, kind: input, shape index: {}]   ;;  %s716_s3 = inlined_call_operand.vmem [shape: f32[16,128], index: 3, kind: output, shape index: {}]  }
   0x1   :  { %v485_v0 = vld [vmem:[%s713_s0 + $0x20] sm:$0x1]  ;;  %v490_v1 = vld [vmem:[%s713_s0 + $0x18] sm:$0xff]  ;;  %v15_v2 = vld [vmem:[%s713_s0 + $0x8] sm:$0xff] }
   0x2   :  { %410 = vmatpush.msk.msra.mxu0 %vm22_vm0, %v485_v0  ;;  %449 = vmatpush.msk.msra.mxu3 %vm22_vm0, %v485_v0  ;;  %v14_v3 = vld [vmem:[%s713_s0] sm:$0xff]  ;;  %v505_v4 = vld [vmem:[%s713_s0 + $0x10] sm:$0xff]  ;;  %v34_v10 = vld [vmem:[%s714_s1 + $0x8] sm:$0xff] }
   0x3   :  { %v507_v5 = vadd.f32 %v15_v2, %v14_v3  ;;  %448 = vmatpush.msk.msra.mxu2 %vm22_vm0, %v485_v0  ;;  %447 = vmatpush.msk.msra.mxu1 %vm22_vm0, %v485_v0  ;;  %v33_v6 = vld [vmem:[%s714_s1] sm:$0xff]  ;;  %v58_v11 = vld [vmem:[%s714_s1 + $0xc8] sm:$0xff]  ;;  %v35_v14 = vld [vmem:[%s714_s1 + $0x10] sm:$0xff] }
   0x4   :  { %181 = vmatpush.msra.mxu0 %v490_v1  ;;  %452 = vmatpush.msra.mxu3 %v490_v1  ;;  %v57_v7 = vld [vmem:[%s714_s1 + $0xc0] sm:$0xff]  ;;  %v50_v12 = vld [vmem:[%s714_s1 + $0x88] sm:$0xff]  ;;  %v59_v15 = vld [vmem:[%s714_s1 + $0xd0] sm:$0xff] }
   0x5   :  { %451 = vmatpush.msra.mxu2 %v490_v1  ;;  %450 = vmatpush.msra.mxu1 %v490_v1  ;;  %v49_v8 = vld [vmem:[%s714_s1 + $0x80] sm:$0xff]  ;;  %v46_v13 = vld [vmem:[%s714_s1 + $0x68] sm:$0xff]  ;;  %v51_v16 = vld [vmem:[%s714_s1 + $0x90] sm:$0xff] }
   0x6   :  { %182 = vmatpush.msra.mxu0 %v505_v4  ;;  %455 = vmatpush.msra.mxu3 %v505_v4  ;;  %v45_v9 = vld [vmem:[%s714_s1 + $0x60] sm:$0xff]  ;;  %v47_v17 = vld [vmem:[%s714_s1 + $0x70] sm:$0xff]  ;;  %v36_v18 = vld [vmem:[%s714_s1 + $0x18] sm:$0xff] }
   0x7   :  { %454 = vmatpush.msra.mxu2 %v505_v4  ;;  %453 = vmatpush.msra.mxu1 %v505_v4  ;;  %v60_v19 = vld [vmem:[%s714_s1 + $0xd8] sm:$0xff]  ;;  %v37_v22 = vld [vmem:[%s714_s1 + $0x20] sm:$0xff]  ;;  %v38_v25 = vld [vmem:[%s714_s1 + $0x28] sm:$0xff] }
   0x8   :  { %183 = vmatpush.msra.mxu0 %v15_v2  ;;  %458 = vmatpush.msra.mxu3 %v15_v2  ;;  %v52_v20 = vld [vmem:[%s714_s1 + $0x98] sm:$0xff]  ;;  %v61_v23 = vld [vmem:[%s714_s1 + $0xe0] sm:$0xff]  ;;  %v62_v26 = vld [vmem:[%s714_s1 + $0xe8] sm:$0xff] }
   0x9   :  { %457 = vmatpush.msra.mxu2 %v15_v2  ;;  %456 = vmatpush.msra.mxu1 %v15_v2  ;;  %v48_v21 = vld [vmem:[%s714_s1 + $0x78] sm:$0xff]  ;;  %v53_v24 = vld [vmem:[%s714_s1 + $0xa0] sm:$0xff]  ;;  %v54_v27 = vld [vmem:[%s714_s1 + $0xa8] sm:$0xff] }
   0xa   :  { %184 = vmatpush.msra.mxu0 %v14_v3  ;;  %461 = vmatpush.msra.mxu3 %v14_v3  ;;  %v39_v28 = vld [vmem:[%s714_s1 + $0x30] sm:$0xff]  ;;  %v40_v31 = vld [vmem:[%s714_s1 + $0x38] sm:$0xff]  ;;  %v41_v34 = vld [vmem:[%s714_s1 + $0x40] sm:$0xff] }
   0xb   :  { %411 = vmatmul.msk.f32.vlgmr.msra.gmra.mxu0 %vm66_vm1, %v33_v6  ;;  %435 = vmatmul.msk.f32.vlgmr.msra.gmra.mxu3 %vm66_vm1, %v57_v7  ;;  %v63_v29 = vld [vmem:[%s714_s1 + $0xf0] sm:$0xff]  ;;  %v64_v32 = vld [vmem:[%s714_s1 + $0xf8] sm:$0xff]  ;;  %v65_v35 = vld [vmem:[%s714_s1 + $0x100] sm:$0x1] }
   0xc   :  { %460 = vmatpush.msra.mxu2 %v14_v3  ;;  %459 = vmatpush.msra.mxu1 %v14_v3  ;;  %v55_v30 = vld [vmem:[%s714_s1 + $0xb0] sm:$0xff]  ;;  %v56_v33 = vld [vmem:[%s714_s1 + $0xb8] sm:$0xff]  ;;  %v42_v36 = vld [vmem:[%s714_s1 + $0x48] sm:$0xff] }
   0xd   :  { %427 = vmatmul.msk.f32.vlgmr.msra.gmra.mxu2 %vm66_vm1, %v49_v8  ;;  %423 = vmatmul.msk.f32.vlgmr.msra.gmra.mxu1 %vm66_vm1, %v45_v9  ;;  %v43_v37 = vld [vmem:[%s714_s1 + $0x50] sm:$0xff]  ;;  %v44_v38 = vld [vmem:[%s714_s1 + $0x58] sm:$0xff] }
  0x13   :  { %412 = vmatmul.msk.f32.gmra.mxu0 %vm66_vm1, %v34_v10  ;;  %436 = vmatmul.msk.f32.gmra.mxu3 %vm66_vm1, %v58_v11 }
  0x15   :  { %428 = vmatmul.msk.f32.gmra.mxu2 %vm66_vm1, %v50_v12  ;;  %424 = vmatmul.msk.f32.gmra.mxu1 %vm66_vm1, %v46_v13 }
  0x1b   :  { %413 = vmatmul.msk.f32.gmra.mxu0 %vm66_vm1, %v35_v14  ;;  %437 = vmatmul.msk.f32.gmra.mxu3 %vm66_vm1, %v59_v15 }
  0x1d   :  { %429 = vmatmul.msk.f32.gmra.mxu2 %vm66_vm1, %v51_v16  ;;  %425 = vmatmul.msk.f32.gmra.mxu1 %vm66_vm1, %v47_v17 }
  0x23   :  { %414 = vmatmul.msk.f32.gmra.mxu0 %vm66_vm1, %v36_v18  ;;  %438 = vmatmul.msk.f32.gmra.mxu3 %vm66_vm1, %v60_v19 }
  0x25   :  { %430 = vmatmul.msk.f32.gmra.mxu2 %vm66_vm1, %v52_v20  ;;  %426 = vmatmul.msk.f32.gmra.mxu1 %vm66_vm1, %v48_v21 }
  0x2b   :  { %415 = vmatmul.msk.f32.gmra.mxu0 %vm66_vm1, %v37_v22  ;;  %439 = vmatmul.msk.f32.gmra.mxu3 %vm66_vm1, %v61_v23 }
  0x2d   :  { %431 = vmatmul.msk.f32.gmra.mxu2 %vm66_vm1, %v53_v24 }
  0x33   :  { %416 = vmatmul.msk.f32.gmra.mxu0 %vm66_vm1, %v38_v25  ;;  %440 = vmatmul.msk.f32.gmra.mxu3 %vm66_vm1, %v62_v26  ;;  %v320_v25 = vld [vmem:[%s715_s2 + $0x10] sm:$0xff] }
  0x35   :  { %432 = vmatmul.msk.f32.gmra.mxu2 %vm66_vm1, %v54_v27 }
  0x3b   :  { %417 = vmatmul.msk.f32.gmra.mxu0 %vm66_vm1, %v39_v28  ;;  %441 = vmatmul.msk.f32.gmra.mxu3 %vm66_vm1, %v63_v29  ;;  %v323_v29 = vld [vmem:[%s715_s2 + $0x28] sm:$0xff] }
  0x3d   :  { %433 = vmatmul.msk.f32.gmra.mxu2 %vm66_vm1, %v55_v30 }
  0x43   :  { %418 = vmatmul.msk.f32.gmra.mxu0 %vm66_vm1, %v40_v31  ;;  %442 = vmatmul.msk.f32.gmra.mxu3 %vm66_vm1, %v64_v32 }
  0x45   :  { %434 = vmatmul.msk.f32.gmra.mxu2 %vm66_vm1, %v56_v33 }
  0x4b   :  { %419 = vmatmul.msk.f32.gmra.mxu0 %vm66_vm1, %v41_v34  ;;  %443 = vmatmul.msk.f32.gmra.mxu3 %vm66_vm1, %v65_v35 }
  0x53   :  { %420 = vmatmul.msk.f32.gmra.mxu0 %vm66_vm1, %v42_v36 }
  0x5b   :  { %421 = vmatmul.msk.f32.gmra.mxu0 %vm66_vm1, %v43_v37 }
  0x63   :  { %422 = vmatmul.msk.f32.gmra.mxu0 %vm66_vm1, %v44_v38  ;;  %v319_v38 = vld [vmem:[%s715_s2 + $0x8] sm:$0xff] }
  0x88   :  { %v653_v39 = vpop.f32.mrf.mxu0 }
  0x8a   :  { %v222_v40 = vpop.f32.mrf.mxu1 }
  0x8b   :  { %v297_v57 = vmax.f32 %v222_v40, 0.0 }
  0x8e   :  { %v258_v41 = vpop.f32.mrf.mxu3 }
  0x8f   :  { %v309_v22 = vmax.f32 %v258_v41, 0.0 }
  0x90   :  { %v655_v42 = vpop.f32.mrf.mxu0  ;;  %v657_v43 = vpop.f32.mrf.mxu2 }
  0x91   :  { %v301_v36 = vmax.f32 %v657_v43, 0.0  ;;  %v322_v43 = vld [vmem:[%s715_s2 + $0x20] sm:$0xff] }
  0x92   :  { %v225_v44 = vpop.f32.mrf.mxu1 }
  0x93   :  { %v298_v55 = vmax.f32 %v225_v44, 0.0 }
  0x96   :  { %v261_v45 = vpop.f32.mrf.mxu3 }
  0x97   :  { %v310_v21 = vmax.f32 %v261_v45, 0.0 }
  0x98   :  { %v659_v46 = vpop.f32.mrf.mxu0  ;;  %v661_v47 = vpop.f32.mrf.mxu2 }
  0x99   :  { %v302_v34 = vmax.f32 %v661_v47, 0.0 }
  0x9a   :  { %v228_v48 = vpop.f32.mrf.mxu1 }
  0x9b   :  { %v299_v53 = vmax.f32 %v228_v48, 0.0 }
  0x9e   :  { %v264_v49 = vpop.f32.mrf.mxu3 }
  0x9f   :  { %v311_v19 = vmax.f32 %v264_v49, 0.0  ;;  %v287_v49 = vmax.f32 %v659_v46, 0.0  ;;  %v20_v46 = vadd.f32 %v507_v5, %v505_v4 }
  0xa0   :  { %v663_v50 = vpop.f32.mrf.mxu0  ;;  %v665_v51 = vpop.f32.mrf.mxu2 }
  0xa1   :  { %v303_v32 = vmax.f32 %v665_v51, 0.0  ;;  %v288_v48 = vmax.f32 %v663_v50, 0.0  ;;  %v286_v51 = vmax.f32 %v655_v42, 0.0  ;;  %v321_v50 = vld [vmem:[%s715_s2 + $0x18] sm:$0xff]  ;;  %v21_v42 = vadd.f32 %v20_v46, %v490_v1 }
  0xa2   :  { %v231_v52 = vpop.f32.mrf.mxu1 }
  0xa3   :  { %v300_v54 = vmax.f32 %v231_v52, 0.0  ;;  %v285_v52 = vmax.f32 %v653_v39, 0.0  ;;  %v23_v39 = vsel %vm22_vm0, %v485_v0, 0.0 }
  0xa5   :  { %334 = vmatpush.msrb.mxu1 %v300_v54  ;;  %v24_v54 = vadd.f32 %v23_v39, %v21_v42 }
  0xa6   :  { %v267_v56 = vpop.f32.mrf.mxu3 }
  0xa7   :  { %335 = vmatpush.msrb.mxu1 %v299_v53  ;;  %v312_v16 = vmax.f32 %v267_v56, 0.0  ;;  %v318_v53 = vld [vmem:[%s715_s2] sm:$0xff] }
  0xa8   :  { %v667_v58 = vpop.f32.mrf.mxu0  ;;  %v243_v59 = vpop.f32.mrf.mxu2 }
  0xa9   :  { %336 = vmatpush.msrb.mxu1 %v298_v55  ;;  %v304_v30 = vmax.f32 %v243_v59, 0.0  ;;  %v289_v47 = vmax.f32 %v667_v58, 0.0  ;;  %v25_v55 = vrot.slane %v24_v54, 4 }
  0xab   :  { %337 = vmatpush.msrb.mxu1 %v297_v57  ;;  %v26_v56 = vadd.f32 %v25_v55, %v24_v54 }
  0xad   :  { %v27_v57 = vrot.slane %v26_v56, 2 }
  0xae   :  { %v270_v60 = vpop.f32.mrf.mxu3 }
  0xaf   :  { %v313_v14 = vmax.f32 %v270_v60, 0.0  ;;  %v28_v58 = vadd.f32 %v27_v57, %v26_v56 }
  0xb0   :  { %v669_v61 = vpop.f32.mrf.mxu0  ;;  %v246_v62 = vpop.f32.mrf.mxu2 }
  0xb1   :  { %v305_v28 = vmax.f32 %v246_v62, 0.0  ;;  %v290_v45 = vmax.f32 %v669_v61, 0.0  ;;  %v29_v59 = vrot.slane %v28_v58, 1 }
  0xb3   :  { %v30_v60 = vadd.f32 %v29_v59, %v28_v58 }
  0xb5   :  { %v409_v61 = vadd.f32 -1.0, %v30_v60 }
  0xb6   :  { %v273_v63 = vpop.f32.mrf.mxu3 }
  0xb7   :  { %v314_v13 = vmax.f32 %v273_v63, 0.0  ;;  %v32_v62 = vmul.f32 0.03125, %v409_v61 }
  0xb8   :  { %v671_v2 = vpop.f32.mrf.mxu0  ;;  %v249_v6 = vpop.f32.mrf.mxu2 }
  0xb9   :  { %v306_v27 = vmax.f32 %v249_v6, 0.0  ;;  %v291_v44 = vmax.f32 %v671_v2, 0.0 }
  0xbe   :  { %v276_v3 = vpop.f32.mrf.mxu3 }
  0xbf   :  { %v315_v9 = vmax.f32 %v276_v3, 0.0 }
  0xc0   :  { %v207_v7 = vpop.f32.mrf.mxu0  ;;  %v252_v12 = vpop.f32.mrf.mxu2 }
  0xc1   :  { %v307_v24 = vmax.f32 %v252_v12, 0.0  ;;  %v292_v41 = vmax.f32 %v207_v7, 0.0 }
  0xc6   :  { %v279_v8 = vpop.f32.mrf.mxu3 }
  0xc7   :  { %v316_v10 = vmax.f32 %v279_v8, 0.0 }
  0xc8   :  { %v210_v11 = vpop.f32.mrf.mxu0  ;;  %v255_v20 = vpop.f32.mrf.mxu2 }
  0xc9   :  { %357 = vmatpush.msrb.mxu2 %v316_v10  ;;  %v308_v23 = vmax.f32 %v255_v20, 0.0  ;;  %v293_v40 = vmax.f32 %v210_v11, 0.0 }
  0xcb   :  { %358 = vmatpush.msrb.mxu2 %v315_v9 }
  0xcd   :  { %359 = vmatpush.msrb.mxu2 %v314_v13 }
  0xce   :  { %v282_v15 = vpop.f32.mrf.mxu3 }
  0xcf   :  { %v317_v17 = vmax.f32 %v282_v15, 0.0  ;;  %360 = vmatpush.msrb.mxu2 %v313_v14 }
  0xd0   :  { %v213_v18 = vpop.f32.mrf.mxu0 }
  0xd1   :  { %361 = vmatpush.msrb.mxu2 %v312_v16  ;;  %444 = vmatpush.msk.msrb.mxu3 %vm22_vm0, %v317_v17  ;;  %v294_v37 = vmax.f32 %v213_v18, 0.0 }
  0xd2   :  { %445 = vmatmul.msk.f32.vlgmr.msrb.gmra.mxu3 %vm324_vm2, %v320_v25 }
  0xd3   :  { %362 = vmatpush.msrb.mxu2 %v311_v19 }
  0xd5   :  { %363 = vmatpush.msrb.mxu2 %v310_v21 }
  0xd7   :  { %364 = vmatpush.msrb.mxu2 %v309_v22 }
  0xd8   :  { %v216_v26 = vpop.f32.mrf.mxu0 }
  0xd9   :  { %365 = vmatpush.msrb.mxu2 %v308_v23  ;;  %v295_v35 = vmax.f32 %v216_v26, 0.0 }
  0xda   :  { %446 = vmatmul.msk.f32.gmra.mxu3 %vm324_vm2, %v323_v29 }
  0xdb   :  { %366 = vmatpush.msrb.mxu2 %v307_v24 }
  0xdd   :  { %367 = vmatpush.msrb.mxu2 %v306_v27 }
  0xdf   :  { %368 = vmatpush.msrb.mxu2 %v305_v28 }
  0xe0   :  { %v219_v31 = vpop.f32.mrf.mxu0 }
  0xe1   :  { %v296_v33 = vmax.f32 %v219_v31, 0.0  ;;  %369 = vmatpush.msrb.mxu2 %v304_v30 }
  0xe3   :  { %338 = vmatpush.msrb.mxu1 %v296_v33  ;;  %370 = vmatpush.msrb.mxu2 %v303_v32 }
  0xe5   :  { %339 = vmatpush.msrb.mxu1 %v295_v35  ;;  %371 = vmatpush.msrb.mxu2 %v302_v34 }
  0xe7   :  { %340 = vmatpush.msrb.mxu1 %v294_v37  ;;  %372 = vmatpush.msrb.mxu2 %v301_v36 }
  0xe8   :  { %373 = vmatmul.f32.vlgmr.msrb.gmra.mxu2 %v319_v38 }
  0xe9   :  { %341 = vmatpush.msrb.mxu1 %v293_v40 }
  0xeb   :  { %342 = vmatpush.msrb.mxu1 %v292_v41 }
  0xed   :  { %343 = vmatpush.msrb.mxu1 %v291_v44 }
  0xef   :  { %344 = vmatpush.msrb.mxu1 %v290_v45 }
  0xf0   :  { %376 = vmatmul.f32.gmra.mxu2 %v322_v43 }
  0xf1   :  { %345 = vmatpush.msrb.mxu1 %v289_v47 }
  0xf3   :  { %346 = vmatpush.msrb.mxu1 %v288_v48 }
  0xf5   :  { %347 = vmatpush.msrb.mxu1 %v287_v49 }
  0xf7   :  { %348 = vmatpush.msrb.mxu1 %v286_v51 }
  0xf9   :  { %349 = vmatpush.msrb.mxu1 %v285_v52 }
  0xfa   :  { %350 = vmatmul.f32.vlgmr.msrb.gmra.mxu1 %v318_v53 }
 0x102   :  { %353 = vmatmul.f32.gmra.mxu1 %v321_v50 }
 0x155   :  { %v397_v3 = vpop.f32.mrf.mxu3 }
 0x15d   :  { %v400_v8 = vpop.f32.mrf.mxu3 }
 0x16b   :  { %v374_v63 = vpop.f32.mrf.mxu2 }
 0x173   :  { %v377_v1 = vpop.f32.mrf.mxu2 }
 0x177   :  { %v351_v2 = vpop.f32.mrf.mxu1 }
 0x178   :  { %v352_v6 = vadd.f32 %v351_v2, %v32_v62 }
 0x17a   :  { %v375_v7 = vadd.f32 %v374_v63, %v352_v6 }
 0x17c   :  { %v398_v4 = vadd.f32 %v397_v3, %v375_v7 }
 0x17e   :  { %403 = vst [vmem:[%s716_s3] sm:$0xff] %v398_v4 }
 0x17f   :  { %v354_v0 = vpop.f32.mrf.mxu1 }
 0x180   :  { %v355_v5 = vadd.f32 %v354_v0, %v32_v62 }
 0x182   :  { %v378_v9 = vadd.f32 %v377_v1, %v355_v5 }
 0x184   :  { %v401_v10 = vadd.f32 %v400_v8, %v378_v9 }
 0x186   :  { %404 = vst [vmem:[%s716_s3 + $0x8] sm:$0xff] %v401_v10 }

</bundles_post_ra>
